<compile_context>
chip_gen: v7x
topology: tpu7x:2x2x1
jax: 0.10.0
libtpu: 0.0.40
codegen_flags: <defaults>
</compile_context>

<pallas_src>
import functools

import jax
import jax.numpy as jnp
from jax.experimental import pallas as pl
from jax.experimental.pallas import tpu as pltpu

BF16 = jnp.bfloat16
F32 = jnp.float32


# --------------------------- hardware / tiling helpers -----------------------
@functools.lru_cache(maxsize=1)
def _vmem_capacity_bytes():
    try:
        return int(pltpu.get_tpu_info().vmem_capacity_bytes)
    except Exception:
        return 64 * 1024 * 1024  # conservative fallback (v7x per-TC VMEM)


def _vmem_limit_bytes():
    # Scoped VMEM limit: 3/4 of physical -> ~96 MiB on v5e/v6e, ~48 MiB on v7x.
    return (3 * _vmem_capacity_bytes()) // 4


def _round_up(x, m):
    return ((x + m - 1) // m) * m


def _pad2(a, shape):
    return jnp.pad(a, [(0, s - d) for d, s in zip(a.shape, shape)])


def _pick_tile(dim, candidates=(512, 256, 128)):
    assert dim % 128 == 0, f"dim {dim} must be a multiple of 128 (caller pads)"
    for t in candidates:
        if dim % t == 0:
            return t
    return 128


def _pick_row_tile(np_dim, max_tile=2048):
    """Row tile for the aggregation matmul: as large as possible, but keep >= 2 row
    blocks whenever Np >= 256 so both v7x TensorCores get work."""
    assert np_dim % 128 == 0
    cap = max_tile if np_dim < 256 else min(max_tile, np_dim // 2)
    best = 128
    t = 128
    while t <= cap:
        if np_dim % t == 0:
            best = t
        t += 128
    return best


def _fused_fits(Np, Fp, Hp, Cp):
    """Rough live-byte estimate for the single fused-forward kernel."""
    live = (Np * Np * 2                              # A_hat bf16
            + Np * (Fp + 2 * Hp) * 2                 # x + bf16 intermediates
            + Np * Cp * 4                            # f32 output
            + (Fp * Hp + 2 * Hp * Hp + Hp * Cp) * 2  # weights bf16
            + 4 * (Fp + 3 * Hp + 2 * Cp))            # biases (rough)
    return 2 * live <= _vmem_limit_bytes()           # 2x slack for layout/temps


# ------------------------------ Pallas kernels --------------------------------
def _matmul_bias_act_kernel(x_ref, w_ref, b_ref, o_ref, acc_ref, *, apply_relu):
    """One (tm, tn) tile of act(X @ W + b), accumulated over the K grid axis."""
    k = pl.program_id(2)

    @pl.when(k == 0)
    def _():
        acc_ref[...] = jnp.zeros_like(acc_ref)

    acc_ref[...] += jnp.dot(x_ref[...], w_ref[...], preferred_element_type=F32)

    @pl.when(k == pl.num_programs(2) - 1)
    def _():
        out = acc_ref[...] + b_ref[...]  # (1, tn) f32 bias broadcast
        if apply_relu:
            out = jnp.maximum(out, 0.0)
        o_ref[...] = out.astype(o_ref.dtype)


def matmul_bias_act(x, w, b, *, apply_relu=False, out_dtype=BF16):
    """Tiled Y = act(x @ w + b). x:[M,K] bf16, w:[K,N] bf16, b:[1,N] f32.
    All dims must be multiples of 128 (caller pads once, up front)."""
    M, K = x.shape
    K2, N = w.shape
    assert K == K2 and b.shape == (1, N)
    tm, tn, tk = _pick_tile(M), _pick_tile(N), _pick_tile(K)
    kernel = functools.partial(_matmul_bias_act_kernel, apply_relu=apply_relu)
    return pl.pallas_call(
        kernel,
        out_shape=jax.ShapeDtypeStruct((M, N), out_dtype),
        grid_spec=pltpu.PrefetchScalarGridSpec(
            num_scalar_prefetch=0,
            grid=(M // tm, N // tn, K // tk),
            in_specs=[
                pl.BlockSpec((tm, tk), lambda i, j, k: (i, k)),
                pl.BlockSpec((tk, tn), lambda i, j, k: (k, j)),
                pl.BlockSpec((1, tn), lambda i, j, k: (0, j)),
            ],
            out_specs=pl.BlockSpec((tm, tn), lambda i, j, k: (i, j)),
            scratch_shapes=[pltpu.VMEM((tm, tn), F32)],
        ),
        compiler_params=pltpu.CompilerParams(
            dimension_semantics=("parallel", "parallel", "arbitrary"),
            vmem_limit_bytes=_vmem_limit_bytes(),
        ),
    )(x, w, b)


def _gcn_layer_kernel(a_ref, h_ref, w_ref, b_ref, o_ref, acc_ref):
    """One (tm, Hp) tile of relu(A_hat @ (H @ W) + b). The feature transform is
    fused into the aggregation k-loop (acc += A_tile @ (h_tile @ W)) so the
    [Np, Hp] intermediate never hits HBM; W/b stay VMEM-resident."""
    k = pl.program_id(1)

    @pl.when(k == 0)
    def _():
        acc_ref[...] = jnp.zeros_like(acc_ref)

    hw = jnp.dot(h_ref[...], w_ref[...], preferred_element_type=F32).astype(BF16)
    acc_ref[...] += jnp.dot(a_ref[...], hw, preferred_element_type=F32)

    @pl.when(k == pl.num_programs(1) - 1)
    def _():
        o_ref[...] = jnp.maximum(acc_ref[...] + b_ref[...], 0.0).astype(o_ref.dtype)


def gcn_layer(ap, h, w, b):
    """relu(A_hat @ (h @ W) + b). ap:[Np,Np] bf16, h:[Np,Hp] bf16, w:[Hp,Hp] bf16,
    b:[1,Hp] f32. Asymmetric tiles: big tm (>=2 row blocks for megacore), tn=Hp,
    tk up to 512."""
    Np = ap.shape[0]
    Hp = w.shape[0]
    assert ap.shape == (Np, Np) and h.shape == (Np, Hp) and w.shape == (Hp, Hp)
    assert b.shape == (1, Hp)
    tm = _pick_row_tile(Np)
    tk = _pick_tile(Np)
    return pl.pallas_call(
        _gcn_layer_kernel,
        out_shape=jax.ShapeDtypeStruct((Np, Hp), BF16),
        grid_spec=pltpu.PrefetchScalarGridSpec(
            num_scalar_prefetch=0,
            grid=(Np // tm, Np // tk),
            in_specs=[
                pl.BlockSpec((tm, tk), lambda i, k: (i, k)),   # A_hat row tile
                pl.BlockSpec((tk, Hp), lambda i, k: (k, 0)),   # H source-node tile
                pl.BlockSpec((Hp, Hp), lambda i, k: (0, 0)),   # W, VMEM-resident
                pl.BlockSpec((1, Hp), lambda i, k: (0, 0)),    # bias, VMEM-resident
            ],
            out_specs=pl.BlockSpec((tm, Hp), lambda i, k: (i, 0)),
            scratch_shapes=[pltpu.VMEM((tm, Hp), F32)],
        ),
        compiler_params=pltpu.CompilerParams(
            dimension_semantics=("parallel", "arbitrary"),
            vmem_limit_bytes=_vmem_limit_bytes(),
        ),
    )(ap, h, w, b)


def _fused_forward_kernel(a_ref, x_ref, we_ref, be_ref, w1_ref, b1_ref,
                          w2_ref, b2_ref, wo_ref, bo_ref, o_ref):
    """Whole forward in one kernel (everything VMEM-resident). Used when the padded
    problem is small; removes 5 launches and all intermediate HBM round-trips."""
    a = a_ref[...]
    h = (jnp.dot(x_ref[...], we_ref[...], preferred_element_type=F32)
         + be_ref[...]).astype(BF16)                                   # encoder
    t = jnp.dot(h, w1_ref[...], preferred_element_type=F32).astype(BF16)
    h = jnp.maximum(jnp.dot(a, t, preferred_element_type=F32) + b1_ref[...],
                    0.0).astype(BF16)                                  # GCN 1 + ReLU
    t = jnp.dot(h, w2_ref[...], preferred_element_type=F32).astype(BF16)
    h = jnp.maximum(jnp.dot(a, t, preferred_element_type=F32) + b2_ref[...],
                    0.0).astype(BF16)                                  # GCN 2 + ReLU
    o_ref[...] = jnp.dot(h, wo_ref[...], preferred_element_type=F32) + bo_ref[...]


def fused_forward(ap, xp, p):
    Np = ap.shape[0]
    Cp = p["w_out"].shape[1]
    return pl.pallas_call(
        _fused_forward_kernel,
        out_shape=jax.ShapeDtypeStruct((Np, Cp), F32),
        compiler_params=pltpu.CompilerParams(vmem_limit_bytes=_vmem_limit_bytes()),
    )(ap, xp, p["w_enc"], p["b_enc"], p["w1"], p["b1"],
      p["w2"], p["b2"], p["w_out"], p["b_out"])


# ------------------------- one-time prep (hoisted) ----------------------------
def build_gcn_adjacency(edge_index, num_nodes):
    """Dense GCN-normalized adjacency A_hat = D^-1/2 (A + I) D^-1/2, A_hat[dst, src]."""
    src, dst = edge_index[0], edge_index[1]
    a = jnp.zeros((num_nodes, num_nodes), F32).at[dst, src].add(1.0)
    a = a + jnp.eye(num_nodes, dtype=F32)               # self loops
    deg = a.sum(axis=1)
    d_inv_sqrt = jnp.where(deg > 0, 1.0 / jnp.sqrt(deg), 0.0)
    return d_inv_sqrt[:, None] * a * d_inv_sqrt[None, :]


def prepare_graph(a_hat):
    """Pad A_hat to a 128 multiple and cast to bf16 ONCE; reuse across layers/forwards."""
    # TODO(synk): keep A_hat in f32 (cast per-tile in-kernel) if tighter accuracy needed.
    n = a_hat.shape[0]
    np_ = _round_up(n, 128)
    return _pad2(a_hat, (np_, np_)).astype(BF16)


def prepare_params(params):
    """Pad all weights/biases to 128 multiples, cast weights bf16 / biases f32, once."""
    f, h = params["w_enc"].shape
    c = params["w_out"].shape[1]
    fp, hp, cp = (_round_up(d, 128) for d in (f, h, c))
    return dict(
        w_enc=_pad2(params["w_enc"], (fp, hp)).astype(BF16),
        b_enc=_pad2(params["b_enc"], (1, hp)).astype(F32),
        w1=_pad2(params["w1"], (hp, hp)).astype(BF16),
        b1=_pad2(params["b1"], (1, hp)).astype(F32),
        w2=_pad2(params["w2"], (hp, hp)).astype(BF16),
        b2=_pad2(params["b2"], (1, hp)).astype(F32),
        w_out=_pad2(params["w_out"], (hp, cp)).astype(BF16),
        b_out=_pad2(params["b_out"], (1, cp)).astype(F32),
    )


# ------------------------------- forward (JAX glue) ----------------------------
def linear_graph_forward(x, ap, prep, *, num_class, force_tiled=False):
    """Forward of LinearGraph(aggr='gcn', layers=2).
    x: [N, F] f32 (unpadded), ap: [Np, Np] bf16 (prepare_graph), prep: prepare_params."""
    n = x.shape[0]
    np_ = ap.shape[0]
    fp, hp = prep["w_enc"].shape
    cp = prep["w_out"].shape[1]

    # Zero padding is safe: padded A_hat columns are zero, so garbage in padded node
    # rows never reaches valid rows; padded feature/class lanes have zero weights,
    # so they stay zero. Final slice removes padded rows/lanes.
    xp = _pad2(x, (np_, fp)).astype(BF16)     # [N,F] is tiny; per-forward pad is cheap

    if (not force_tiled) and _fused_fits(np_, fp, hp, cp):
        out = fused_forward(ap, xp, prep)                            # one kernel
    else:
        h = matmul_bias_act(xp, prep["w_enc"], prep["b_enc"])        # encoder
        h = gcn_layer(ap, h, prep["w1"], prep["b1"])                 # GCNConv 1 + ReLU
        h = gcn_layer(ap, h, prep["w2"], prep["b2"])                 # GCNConv 2 + ReLU
        out = matmul_bias_act(h, prep["w_out"], prep["b_out"],       # head, f32 out
                              out_dtype=F32)
    return out[:n, :num_class]


def init_params(key, in_feat, hidden_dim, num_class):
    """Deterministic uniform init (PyTorch-Linear-style fan-in scaling)."""
    ks = jax.random.split(key, 8)

    def lin(kw, kb, fan_in, fan_out):
        bound = 1.0 / jnp.sqrt(float(fan_in))
        w = jax.random.uniform(kw, (fan_in, fan_out), F32, -bound, bound)
        b = jax.random.uniform(kb, (1, fan_out), F32, -bound, bound)
        return w, b

    w_enc, b_enc = lin(ks[0], ks[1], in_feat, hidden_dim)
    w1, b1 = lin(ks[2], ks[3], hidden_dim, hidden_dim)
    w2, b2 = lin(ks[4], ks[5], hidden_dim, hidden_dim)
    w_out, b_out = lin(ks[6], ks[7], hidden_dim, num_class)
    return dict(w_enc=w_enc, b_enc=b_enc, w1=w1, b1=b1,
                w2=w2, b2=b2, w_out=w_out, b_out=b_out)


def reference_forward(x, a_hat, p):
    h = x @ p["w_enc"] + p["b_enc"]
    h = jnp.maximum(a_hat @ (h @ p["w1"]) + p["b1"], 0.0)
    h = jnp.maximum(a_hat @ (h @ p["w2"]) + p["b2"], 0.0)
    return h @ p["w_out"] + p["b_out"]


# ------------------------------------ main -------------------------------------
if __name__ == "__main__":
    key = jax.random.PRNGKey(0)
    kx, kp, kx2, kp2 = jax.random.split(key, 4)

    # ---- test 1: shipped toy size -> single fused-kernel path ----
    N, IN_FEAT, HIDDEN, NUM_CLASS = 8, 16, 32, 4
    x = jax.random.normal(kx, (N, IN_FEAT), F32)
    edge_index = jnp.array([
        [0, 1, 1, 2, 2, 3, 3, 4, 4, 5, 6, 7],
        [1, 0, 2, 1, 3, 2, 4, 3, 5, 4, 7, 6],
    ], dtype=jnp.int32)

    a_hat = build_gcn_adjacency(edge_index, N)
    params = init_params(kp, IN_FEAT, HIDDEN, NUM_CLASS)
    ap = prepare_graph(a_hat)        # hoisted: padded + bf16-cast once
    prep = prepare_params(params)    # hoisted: padded + cast once

    fwd = jax.jit(functools.partial(linear_graph_forward, num_class=NUM_CLASS))
    out = jax.block_until_ready(fwd(x, ap, prep))
    ref = reference_forward(x, a_hat, params)
    assert out.shape == (N, NUM_CLASS)
    assert jnp.allclose(out, ref, atol=5e-2, rtol=5e-2), \
        float(jnp.max(jnp.abs(out - ref)))

    # ---- test 2: exercise the scalable tiled path (fused GCN aggregation) ----
    N2, F2, H2, C2 = 256, 48, 64, 6
    x2 = jax.random.normal(kx2, (N2, F2), F32)
    idx = jnp.arange(N2, dtype=jnp.int32)
    ring = jnp.stack([jnp.concatenate([idx, (idx + 1) % N2]),
                      jnp.concatenate([(idx + 1) % N2, idx])])
    a_hat2 = build_gcn_adjacency(ring, N2)
    params2 = init_params(kp2, F2, H2, C2)
    ap2 = prepare_graph(a_hat2)
    prep2 = prepare_params(params2)

    fwd_tiled = jax.jit(functools.partial(linear_graph_forward,
                                          num_class=C2, force_tiled=True))
    out2 = jax.block_until_ready(fwd_tiled(x2, ap2, prep2))
    ref2 = reference_forward(x2, a_hat2, params2)
    assert out2.shape == (N2, C2)
    assert jnp.allclose(out2, ref2, atol=1e-1, rtol=1e-1), \
        float(jnp.max(jnp.abs(out2 - ref2)))

    print("KERNEL_OK")
</pallas_src>

<mosaic_0001>
module attributes {stable_mosaic.version = 11 : i64} {
  func.func @_fused_forward_kernel(%arg0: memref<128x128xbf16, #tpu.memory_space<vmem>>, %arg1: memref<128x128xbf16, #tpu.memory_space<vmem>>, %arg2: memref<128x128xbf16, #tpu.memory_space<vmem>>, %arg3: memref<1x128xf32, #tpu.memory_space<vmem>>, %arg4: memref<128x128xbf16, #tpu.memory_space<vmem>>, %arg5: memref<1x128xf32, #tpu.memory_space<vmem>>, %arg6: memref<128x128xbf16, #tpu.memory_space<vmem>>, %arg7: memref<1x128xf32, #tpu.memory_space<vmem>>, %arg8: memref<128x128xbf16, #tpu.memory_space<vmem>>, %arg9: memref<1x128xf32, #tpu.memory_space<vmem>>, %arg10: memref<128x128xf32, #tpu.memory_space<vmem>>) attributes {dimension_semantics = [], scalar_prefetch = 0 : i64, scratch_operands = 0 : i64, tpu.core_type = #tpu.core_type<tc>} {
    %c0 = arith.constant 0 : index
    %c0_0 = arith.constant 0 : index
    %0 = vector.load %arg0[%c0, %c0_0] : memref<128x128xbf16, #tpu.memory_space<vmem>>, vector<128x128xbf16>
    %c0_1 = arith.constant 0 : index
    %c0_2 = arith.constant 0 : index
    %1 = vector.load %arg1[%c0_1, %c0_2] : memref<128x128xbf16, #tpu.memory_space<vmem>>, vector<128x128xbf16>
    %c0_3 = arith.constant 0 : index
    %c0_4 = arith.constant 0 : index
    %2 = vector.load %arg2[%c0_3, %c0_4] : memref<128x128xbf16, #tpu.memory_space<vmem>>, vector<128x128xbf16>
    %cst = arith.constant dense<0.000000e+00> : vector<128x128xf32>
    %3 = tpu.matmul %1, %2, %cst {dimension_numbers = #tpu.dot_dimension_numbers<[1], [0], [0], [1], [0, 0, 1, 1], [], []>} : vector<128x128xbf16>, vector<128x128xbf16>, vector<128x128xf32> -> vector<128x128xf32>
    %c0_5 = arith.constant 0 : index
    %c0_6 = arith.constant 0 : index
    %4 = vector.load %arg3[%c0_5, %c0_6] : memref<1x128xf32, #tpu.memory_space<vmem>>, vector<1x128xf32>
    %5 = vector.broadcast %4 : vector<1x128xf32> to vector<128x128xf32>
    %6 = arith.addf %3, %5 : vector<128x128xf32>
    %7 = arith.truncf %6 : vector<128x128xf32> to vector<128x128xbf16>
    %c0_7 = arith.constant 0 : index
    %c0_8 = arith.constant 0 : index
    %8 = vector.load %arg4[%c0_7, %c0_8] : memref<128x128xbf16, #tpu.memory_space<vmem>>, vector<128x128xbf16>
    %cst_9 = arith.constant dense<0.000000e+00> : vector<128x128xf32>
    %9 = tpu.matmul %7, %8, %cst_9 {dimension_numbers = #tpu.dot_dimension_numbers<[1], [0], [0], [1], [0, 0, 1, 1], [], []>} : vector<128x128xbf16>, vector<128x128xbf16>, vector<128x128xf32> -> vector<128x128xf32>
    %10 = arith.truncf %9 : vector<128x128xf32> to vector<128x128xbf16>
    %cst_10 = arith.constant dense<0.000000e+00> : vector<128x128xf32>
    %11 = tpu.matmul %0, %10, %cst_10 {dimension_numbers = #tpu.dot_dimension_numbers<[1], [0], [0], [1], [0, 0, 1, 1], [], []>} : vector<128x128xbf16>, vector<128x128xbf16>, vector<128x128xf32> -> vector<128x128xf32>
    %c0_11 = arith.constant 0 : index
    %c0_12 = arith.constant 0 : index
    %12 = vector.load %arg5[%c0_11, %c0_12] : memref<1x128xf32, #tpu.memory_space<vmem>>, vector<1x128xf32>
    %13 = vector.broadcast %12 : vector<1x128xf32> to vector<128x128xf32>
    %14 = arith.addf %11, %13 : vector<128x128xf32>
    %cst_13 = arith.constant 0.000000e+00 : f32
    %15 = vector.broadcast %cst_13 : f32 to vector<128x128xf32>
    %16 = arith.maximumf %14, %15 : vector<128x128xf32>
    %17 = arith.truncf %16 : vector<128x128xf32> to vector<128x128xbf16>
    %c0_14 = arith.constant 0 : index
    %c0_15 = arith.constant 0 : index
    %18 = vector.load %arg6[%c0_14, %c0_15] : memref<128x128xbf16, #tpu.memory_space<vmem>>, vector<128x128xbf16>
    %cst_16 = arith.constant dense<0.000000e+00> : vector<128x128xf32>
    %19 = tpu.matmul %17, %18, %cst_16 {dimension_numbers = #tpu.dot_dimension_numbers<[1], [0], [0], [1], [0, 0, 1, 1], [], []>} : vector<128x128xbf16>, vector<128x128xbf16>, vector<128x128xf32> -> vector<128x128xf32>
    %20 = arith.truncf %19 : vector<128x128xf32> to vector<128x128xbf16>
    %cst_17 = arith.constant dense<0.000000e+00> : vector<128x128xf32>
    %21 = tpu.matmul %0, %20, %cst_17 {dimension_numbers = #tpu.dot_dimension_numbers<[1], [0], [0], [1], [0, 0, 1, 1], [], []>} : vector<128x128xbf16>, vector<128x128xbf16>, vector<128x128xf32> -> vector<128x128xf32>
    %c0_18 = arith.constant 0 : index
    %c0_19 = arith.constant 0 : index
    %22 = vector.load %arg7[%c0_18, %c0_19] : memref<1x128xf32, #tpu.memory_space<vmem>>, vector<1x128xf32>
    %23 = vector.broadcast %22 : vector<1x128xf32> to vector<128x128xf32>
    %24 = arith.addf %21, %23 : vector<128x128xf32>
    %cst_20 = arith.constant 0.000000e+00 : f32
    %25 = vector.broadcast %cst_20 : f32 to vector<128x128xf32>
    %26 = arith.maximumf %24, %25 : vector<128x128xf32>
    %27 = arith.truncf %26 : vector<128x128xf32> to vector<128x128xbf16>
    %c0_21 = arith.constant 0 : index
    %c0_22 = arith.constant 0 : index
    %28 = vector.load %arg8[%c0_21, %c0_22] : memref<128x128xbf16, #tpu.memory_space<vmem>>, vector<128x128xbf16>
    %cst_23 = arith.constant dense<0.000000e+00> : vector<128x128xf32>
    %29 = tpu.matmul %27, %28, %cst_23 {dimension_numbers = #tpu.dot_dimension_numbers<[1], [0], [0], [1], [0, 0, 1, 1], [], []>} : vector<128x128xbf16>, vector<128x128xbf16>, vector<128x128xf32> -> vector<128x128xf32>
    %c0_24 = arith.constant 0 : index
    %c0_25 = arith.constant 0 : index
    %30 = vector.load %arg9[%c0_24, %c0_25] : memref<1x128xf32, #tpu.memory_space<vmem>>, vector<1x128xf32>
    %31 = vector.broadcast %30 : vector<1x128xf32> to vector<128x128xf32>
    %32 = arith.addf %29, %31 : vector<128x128xf32>
    %c0_26 = arith.constant 0 : index
    %c0_27 = arith.constant 0 : index
    %33 = vector.load %arg10[%c0_26, %c0_27] : memref<128x128xf32, #tpu.memory_space<vmem>>, vector<128x128xf32>
    tpu.vector_store %arg10[%c0_26, %c0_27], %32 {strides = array<i32>} : memref<128x128xf32, #tpu.memory_space<vmem>>, vector<128x128xf32>,
    return
  }
}

</mosaic_0001>

<bundles_post_ra>
// kernel: linear_graph_forward.1
= control target key start
LH: loop header
LB: loop body
LE: loop exit
PB: predicated region body
PF: predicated region fallthrough
CT: control target
= control target key end

     0   :  { %15 = vsyncpa [#allocation3], 0  ;;  %s1943_s0 = inlined_call_operand.vmem [shape: bf16[128,128], index: 0, kind: input, shape index: {}]   ;;  %s1944_s1 = inlined_call_operand.vmem [shape: bf16[128,128], index: 1, kind: input, shape index: {}]   ;;  %s1945_s2 = inlined_call_operand.hbm [shape: bf16[128,128], index: 2, kind: input, shape index: {}]   ;;  %s1946_s3 = inlined_call_operand.vmem [shape: f32[1,128], index: 3, kind: input, shape index: {}]   ;;  %s1947_s4 = inlined_call_operand.hbm [shape: bf16[128,128], index: 4, kind: input, shape index: {}]   ;;  %s1948_s5 = inlined_call_operand.vmem [shape: f32[1,128], index: 5, kind: input, shape index: {}]   ;;  %s1949_s6 = inlined_call_operand.hbm [shape: bf16[128,128], index: 6, kind: input, shape index: {}]   ;;  %s1950_s7 = inlined_call_operand.vmem [shape: f32[1,128], index: 7, kind: input, shape index: {}]   ;;  %s1951_s8 = inlined_call_operand.hbm [shape: bf16[128,128], index: 8, kind: input, shape index: {}]   ;;  %s1952_s9 = inlined_call_operand.vmem [shape: f32[1,128], index: 9, kind: input, shape index: {}]   ;;  %s1953_s10 = inlined_call_operand.vmem [shape: f32[128,128], index: 10, kind: output, shape index: {}]  }
   0x1   :  { %16 = vsyncpa [#allocation5], 0 }
   0x2   :  { %17 = vsyncpa [#allocation8], 0  ;;  %s1668_s13 = smov [#allocation4]   ;;  %s1669_s15 = smov [#allocation2]  }
   0x3   :  { %s41_s14 = sshll.u32 %s1668_s13, 4  ;;  %s27_s16 = sshll.u32 %s1669_s15, 4  ;;  %s42_s14 = int_to_ptr.vmem [resolvable:$true] %s41_s14  ;;  %s1729_s16 = int_to_ptr.vmem [resolvable:$true] %s27_s16 }
   0x4   :  { %s1574_s19 = scalar_lea.hbm %s1947_s4, 1024 }
   0x5   :  { %p1575_p0 = scmp.ne.s32.totalorder %s1947_s4, %s1574_s19  ;;  %p1578_p1 = scmp.lt.u32.totalorder %s1574_s19, %s1947_s4 }
   0x7   :  { %p1580_p2 = pnand %p1578_p1, %p1575_p0 }
   0x9   :  { %1583 = shalt.err (!%p1580_p2)
}
   0xa   :  { %s1584_s24 = scalar_lea.vmem %s42_s14, 1024  ;;  %p1589_p4 = scmp.lt.s32.totalorder %s42_s14, %s42_s14 }
   0xb   :  { %p1585_p3 = scmp.ne.s32.totalorder %s42_s14, %s1584_s24  ;;  %p1590_p5 = scmp.lt.s32.totalorder %s1584_s24, %s1584_s24 }
   0xd   :  { %p1591_p6 = por %p1590_p5, %p1589_p4 }
   0xf   :  { %p1592_p7 = pnand %p1591_p6, %p1585_p3 }
  0x11   :  { %1595 = shalt.err (!%p1592_p7)
}
  0x12   :  { %s1670_s25 = smov 64   ;;  %s1671_s26 = smov 4  }
  0x13   :  { %47 = dma.hbm_to_vmem [thread:$0]  %s1947_s4, 1024, %s42_s14, [#allocation5], %s1670_s25, %s1670_s25, %s1671_s26  }
  0x14   :  { %s1596_s11 = scalar_lea.hbm %s1945_s2, 1024 }
  0x15   :  { %p1597_p8 = scmp.ne.s32.totalorder %s1945_s2, %s1596_s11  ;;  %p1600_p9 = scmp.lt.u32.totalorder %s1596_s11, %s1945_s2 }
  0x17   :  { %p1602_p10 = pnand %p1600_p9, %p1597_p8 }
  0x19   :  { %1605 = shalt.err (!%p1602_p10)
}
  0x1a   :  { %s1606_s18 = scalar_lea.vmem %s1729_s16, 1024  ;;  %p1611_p12 = scmp.lt.s32.totalorder %s1729_s16, %s1729_s16 }
  0x1b   :  { %p1607_p11 = scmp.ne.s32.totalorder %s1729_s16, %s1606_s18  ;;  %p1612_p13 = scmp.lt.s32.totalorder %s1606_s18, %s1606_s18 }
  0x1d   :  { %p1613_p0 = por %p1612_p13, %p1611_p12 }
  0x1f   :  { %p1614_p1 = pnand %p1613_p0, %p1607_p11 }
  0x21   :  { %1617 = shalt.err (!%p1614_p1)
}
  0x22   :  { %33 = dma.hbm_to_vmem [thread:$0]  %s1945_s2, 1024, %s1729_s16, [#allocation3], %s1670_s25, %s1670_s25, %s1671_s26  }
  0x23   :  { %s1672_s19 = smov [#allocation6]   ;;  %s1673_s21 = smov [#allocation7]  }
  0x24   :  { %s55_s20 = sshll.u32 %s1672_s19, 4  ;;  %s69_s22 = sshll.u32 %s1673_s21, 4  ;;  %s56_s20 = int_to_ptr.vmem [resolvable:$true] %s55_s20  ;;  %s1766_s22 = int_to_ptr.vmem [resolvable:$true] %s69_s22 }
  0x25   :  { %s1618_s27 = scalar_lea.hbm %s1949_s6, 1024 }
  0x26   :  { %p1619_p2 = scmp.ne.s32.totalorder %s1949_s6, %s1618_s27  ;;  %p1622_p3 = scmp.lt.u32.totalorder %s1618_s27, %s1949_s6 }
  0x28   :  { %p1624_p4 = pnand %p1622_p3, %p1619_p2 }
  0x2a   :  { %1627 = shalt.err (!%p1624_p4)
}
  0x2b   :  { %s1628_s2 = scalar_lea.vmem %s56_s20, 1024  ;;  %p1633_p6 = scmp.lt.s32.totalorder %s56_s20, %s56_s20 }
  0x2c   :  { %p1629_p5 = scmp.ne.s32.totalorder %s56_s20, %s1628_s2  ;;  %p1634_p7 = scmp.lt.s32.totalorder %s1628_s2, %s1628_s2 }
  0x2e   :  { %p1635_p8 = por %p1634_p7, %p1633_p6 }
  0x30   :  { %p1636_p9 = pnand %p1635_p8, %p1629_p5 }
  0x32   :  { %1639 = shalt.err (!%p1636_p9)
}
  0x33   :  { %61 = dma.hbm_to_vmem [thread:$0]  %s1949_s6, 1024, %s56_s20, [#allocation5], %s1670_s25, %s1670_s25, %s1671_s26  }
  0x34   :  { %s1640_s17 = scalar_lea.hbm %s1951_s8, 1024 }
  0x35   :  { %p1641_p10 = scmp.ne.s32.totalorder %s1951_s8, %s1640_s17  ;;  %p1644_p11 = scmp.lt.u32.totalorder %s1640_s17, %s1951_s8 }
  0x37   :  { %p1646_p12 = pnand %p1644_p11, %p1641_p10 }
  0x39   :  { %1649 = shalt.err (!%p1646_p12)
}
  0x3a   :  { %s1650_s21 = scalar_lea.vmem %s1766_s22, 1024  ;;  %p1655_p0 = scmp.lt.s32.totalorder %s1766_s22, %s1766_s22 }
  0x3b   :  { %p1651_p13 = scmp.ne.s32.totalorder %s1766_s22, %s1650_s21  ;;  %p1656_p1 = scmp.lt.s32.totalorder %s1650_s21, %s1650_s21 }
  0x3d   :  { %p1657_p2 = por %p1656_p1, %p1655_p0 }
  0x3f   :  { %p1658_p3 = pnand %p1657_p2, %p1651_p13 }
  0x41   :  { %1661 = shalt.err (!%p1658_p3)
}
  0x42   :  { %75 = dma.hbm_to_vmem [thread:$0]  %s1951_s8, 1024, %s1766_s22, [#allocation8], %s1670_s25, %s1670_s25, %s1671_s26  }
  0x43   :  { %1662 = dma.done.wait [#allocation3], 1024  }
  0x44   :  { %1663 = vsyncadd [#allocation3], 4294966272 }
  0x45   :  { %1664 = dma.done.wait [#allocation5], 2048  }
  0x46   :  { %1665 = vsyncadd [#allocation5], 4294965248 }
  0x47   :  { %1666 = dma.done.wait [#allocation8], 1024  }
  0x48   :  { %1667 = vsyncadd [#allocation8], 4294966272  ;;  %v1526_v0 = vld [vmem:[#allocation2] sm:$0xff]   ;;  %v1527_v1 = vld [vmem:[#allocation2 + $0x8] sm:$0xff]  }
  0x49   :  { %1328 = vmatprep.subr.bf16.mxu0 %v1526_v0  ;;  %v1528_v2 = vld [vmem:[#allocation2 + $0x10] sm:$0xff]   ;;  %v1529_v3 = vld [vmem:[#allocation2 + $0x18] sm:$0xff]   ;;  %v1534_v4 = vld [vmem:[%s1944_s1] sm:$0xff]  }
  0x4a   :  { %1329 = vmatpush3.bf16.msra.mxu0 %v1526_v0  ;;  %1344 = vmatprep.mubr.bf16.mxu0 %v1534_v4  ;;  %v1530_v5 = vld [vmem:[#allocation2 + $0x20] sm:$0xff]   ;;  %v1531_v6 = vld [vmem:[#allocation2 + $0x28] sm:$0xff]   ;;  %v1532_v9 = vld [vmem:[#allocation2 + $0x30] sm:$0xff]  }
  0x4b   :  { %1330 = vmatprep.subr.bf16.mxu0 %v1527_v1  ;;  %v1542_v7 = vld [vmem:[#allocation4] sm:$0xff]   ;;  %v1543_v8 = vld [vmem:[#allocation4 + $0x8] sm:$0xff]   ;;  %v1544_v10 = vld [vmem:[#allocation4 + $0x10] sm:$0xff]  }
  0x4c   :  { %1360 = vmatprep.subr.bf16.mxu1 %v1542_v7  ;;  %v1533_v11 = vld [vmem:[#allocation2 + $0x38] sm:$0xff]   ;;  %v1546_v13 = vld [vmem:[#allocation4 + $0x20] sm:$0xff]   ;;  %v1535_v14 = vld [vmem:[%s1944_s1 + $0x8] sm:$0xff]  }
  0x4d   :  { %1361 = vmatpush3.bf16.msra.mxu1 %v1542_v7  ;;  %v1545_v12 = vld [vmem:[#allocation4 + $0x18] sm:$0xff]   ;;  %v1536_v15 = vld [vmem:[%s1944_s1 + $0x10] sm:$0xff]   ;;  %v1547_v16 = vld [vmem:[#allocation4 + $0x28] sm:$0xff]  }
  0x4e   :  { %1331 = vmatpush3.bf16.msra.mxu0 %v1527_v1  ;;  %1362 = vmatprep.subr.bf16.mxu1 %v1543_v8  ;;  %v1537_v17 = vld [vmem:[%s1944_s1 + $0x18] sm:$0xff]   ;;  %v1538_v18 = vld [vmem:[%s1944_s1 + $0x20] sm:$0xff]   ;;  %v1539_v19 = vld [vmem:[%s1944_s1 + $0x28] sm:$0xff]  }
  0x4f   :  { %1332 = vmatprep.subr.bf16.mxu0 %v1528_v2  ;;  %v1540_v20 = vld [vmem:[%s1944_s1 + $0x30] sm:$0xff]   ;;  %v1541_v21 = vld [vmem:[%s1944_s1 + $0x38] sm:$0xff]   ;;  %v1180_v25 = vld [vmem:[%s1946_s3] ss:$0 sm:$0xff] }
  0x50   :  { %v1548_v22 = vld [vmem:[#allocation4 + $0x30] sm:$0xff]   ;;  %v1549_v23 = vld [vmem:[#allocation4 + $0x38] sm:$0xff]   ;;  %v1833_v1 = vld [vmem:[%s1943_s0] sm:$0xff]  }
  0x51   :  { %1363 = vmatpush3.bf16.msra.mxu1 %v1543_v8  ;;  %v1560_v4 = vld [vmem:[#allocation6 + $0x10] sm:$0xff]   ;;  %v1563_v7 = vld [vmem:[#allocation6 + $0x28] sm:$0xff]  }
  0x52   :  { %1333 = vmatpush3.bf16.msra.mxu0 %v1528_v2  ;;  %1364 = vmatprep.subr.bf16.mxu1 %v1544_v10  ;;  %v1558_v2 = vld [vmem:[#allocation6] sm:$0xff]  }
  0x53   :  { %1334 = vmatprep.subr.bf16.mxu0 %v1529_v3 }
  0x55   :  { %1365 = vmatpush3.bf16.msra.mxu1 %v1544_v10 }
  0x56   :  { %1335 = vmatpush3.bf16.msra.mxu0 %v1529_v3  ;;  %1366 = vmatprep.subr.bf16.mxu1 %v1545_v12  ;;  %v1559_v3 = vld [vmem:[#allocation6 + $0x8] sm:$0xff]  }
  0x57   :  { %1336 = vmatprep.subr.bf16.mxu0 %v1530_v5 }
  0x59   :  { %1367 = vmatpush3.bf16.msra.mxu1 %v1545_v12 }
  0x5a   :  { %1337 = vmatpush3.bf16.msra.mxu0 %v1530_v5  ;;  %1368 = vmatprep.subr.bf16.mxu1 %v1546_v13  ;;  %v1561_v5 = vld [vmem:[#allocation6 + $0x18] sm:$0xff]  }
  0x5b   :  { %1338 = vmatprep.subr.bf16.mxu0 %v1531_v6 }
  0x5d   :  { %1369 = vmatpush3.bf16.msra.mxu1 %v1546_v13 }
  0x5e   :  { %1339 = vmatpush3.bf16.msra.mxu0 %v1531_v6  ;;  %1370 = vmatprep.subr.bf16.mxu1 %v1547_v16  ;;  %v1562_v6 = vld [vmem:[#allocation6 + $0x20] sm:$0xff]  }
  0x5f   :  { %1340 = vmatprep.subr.bf16.mxu0 %v1532_v9 }
  0x61   :  { %1371 = vmatpush3.bf16.msra.mxu1 %v1547_v16 }
  0x62   :  { %1341 = vmatpush3.bf16.msra.mxu0 %v1532_v9  ;;  %1372 = vmatprep.subr.bf16.mxu1 %v1548_v22 }
  0x63   :  { %1342 = vmatprep.subr.bf16.mxu0 %v1533_v11 }
  0x65   :  { %1373 = vmatpush3.bf16.msra.mxu1 %v1548_v22 }
  0x66   :  { %1343 = vmatpush3.bf16.msra.mxu0 %v1533_v11  ;;  %1374 = vmatprep.subr.bf16.mxu1 %v1549_v23 }
  0x69   :  { %1345 = vmatmul.mubr.bf16.vlgmr.msra.gmra.mrb[0].mxu0 %v1535_v14  ;;  %1375 = vmatpush3.bf16.msra.mxu1 %v1549_v23 }
  0x6a   :  { %1348 = vmatprep.mubr.bf16.mxu0 %v1536_v15  ;;  %1424 = vmatprep.subr.bf16.mxu1 %v1558_v2 }
  0x71   :  { %1349 = vmatmul.mubr.bf16.gmra.mrb[4].mxu0 %v1537_v17 }
  0x72   :  { %1352 = vmatprep.mubr.bf16.mxu0 %v1538_v18 }
  0x79   :  { %1353 = vmatmul.mubr.bf16.gmra.mrb[8].mxu0 %v1539_v19 }
  0x7a   :  { %1356 = vmatprep.mubr.bf16.mxu0 %v1540_v20 }
  0x81   :  { %1357 = vmatmul.mubr.bf16.gmra.mrb[12].mxu0 %v1541_v21 }
  0x82   :  { %1408 = vmatprep.mubr.bf16.mxu0 %v1833_v1 }
 0x13c   :  { %v1346_v24 = vpop.f32.mrb[0].mxu0 }
 0x13d   :  { %v276_v26 = vpop.f32.mrb[1].mxu0  ;;  %v285_v28 = vadd.f32 %v1346_v24, %v1180_v25 }
 0x13e   :  { %v1347_v27 = vpop.f32.mrb[2].mxu0  ;;  %v277_v31 = vadd.f32 %v1180_v25, %v276_v26 }
 0x13f   :  { %v288_v29 = vadd.f32 %v1347_v27, %v1180_v25  ;;  %v279_v30 = vpop.f32.mrb[3].mxu0 }
 0x140   :  { %v280_v32 = vadd.f32 %v1180_v25, %v279_v30 }
 0x141   :  { %v340_v33 = vpack.c.bf16 %v288_v29, %v285_v28 }
 0x142   :  { %v339_v34 = vpack.c.bf16 %v280_v32, %v277_v31  ;;  %v1839_v32 = vld [vmem:[%s1943_s0 + $0x8] sm:$0xff]  }
 0x144   :  { %v1350_v35 = vpop.f32.mrb[4].mxu0  ;;  %1376 = vmatprep.mubr.bf16.mxu1 %v339_v34  ;;  %v1851_v34 = vld [vmem:[%s1943_s0 + $0x18] sm:$0xff]  }
 0x145   :  { %v292_v36 = vpop.f32.mrb[5].mxu0  ;;  %1377 = vmatmul.mubr.bf16.vlgmr.msra.gmra.mrb[0].mxu1 %v340_v33  ;;  %v301_v38 = vadd.f32 %v1350_v35, %v1180_v25  ;;  %v1844_v33 = vld [vmem:[%s1943_s0 + $0x10] sm:$0xff]   ;;  %v1856_v35 = vld [vmem:[%s1943_s0 + $0x20] sm:$0xff]  }
 0x146   :  { %v1351_v37 = vpop.f32.mrb[6].mxu0  ;;  %v293_v41 = vadd.f32 %v1180_v25, %v292_v36  ;;  %1425 = vmatpush3.bf16.msra.mxu1 %v1558_v2  ;;  %v1863_v36 = vld [vmem:[%s1943_s0 + $0x28] sm:$0xff]  }
 0x147   :  { %v304_v39 = vadd.f32 %v1351_v37, %v1180_v25  ;;  %v295_v40 = vpop.f32.mrb[7].mxu0  ;;  %1426 = vmatprep.subr.bf16.mxu1 %v1559_v3  ;;  %v1868_v37 = vld [vmem:[%s1943_s0 + $0x30] sm:$0xff]  }
 0x148   :  { %v296_v42 = vadd.f32 %v1180_v25, %v295_v40  ;;  %v1565_v40 = vld [vmem:[#allocation6 + $0x38] sm:$0xff]  }
 0x149   :  { %v342_v43 = vpack.c.bf16 %v304_v39, %v301_v38  ;;  %v1875_v38 = vld [vmem:[%s1943_s0 + $0x38] sm:$0xff]   ;;  %v1564_v39 = vld [vmem:[#allocation6 + $0x30] sm:$0xff]  }
 0x14a   :  { %v341_v44 = vpack.c.bf16 %v296_v42, %v293_v41  ;;  %1427 = vmatpush3.bf16.msra.mxu1 %v1559_v3  ;;  %v1205_v41 = vld [vmem:[%s1948_s5] ss:$0 sm:$0xff] }
 0x14b   :  { %1428 = vmatprep.subr.bf16.mxu1 %v1560_v4 }
 0x14c   :  { %v1354_v45 = vpop.f32.mrb[8].mxu0  ;;  %1380 = vmatprep.mubr.bf16.mxu1 %v341_v44 }
 0x14d   :  { %v308_v46 = vpop.f32.mrb[9].mxu0  ;;  %1381 = vmatmul.mubr.bf16.gmra.mrb[4].mxu1 %v342_v43  ;;  %v317_v48 = vadd.f32 %v1354_v45, %v1180_v25 }
 0x14e   :  { %v1355_v47 = vpop.f32.mrb[10].mxu0  ;;  %v309_v51 = vadd.f32 %v1180_v25, %v308_v46  ;;  %1429 = vmatpush3.bf16.msra.mxu1 %v1560_v4 }
 0x14f   :  { %v320_v49 = vadd.f32 %v1355_v47, %v1180_v25  ;;  %v311_v50 = vpop.f32.mrb[11].mxu0  ;;  %1430 = vmatprep.subr.bf16.mxu1 %v1561_v5 }
 0x150   :  { %v312_v52 = vadd.f32 %v1180_v25, %v311_v50 }
 0x151   :  { %v344_v53 = vpack.c.bf16 %v320_v49, %v317_v48 }
 0x152   :  { %v343_v54 = vpack.c.bf16 %v312_v52, %v309_v51  ;;  %1431 = vmatpush3.bf16.msra.mxu1 %v1561_v5 }
 0x153   :  { %1432 = vmatprep.subr.bf16.mxu1 %v1562_v6 }
 0x154   :  { %v1358_v55 = vpop.f32.mrb[12].mxu0  ;;  %1384 = vmatprep.mubr.bf16.mxu1 %v343_v54 }
 0x155   :  { %v324_v56 = vpop.f32.mrb[13].mxu0  ;;  %1385 = vmatmul.mubr.bf16.gmra.mrb[8].mxu1 %v344_v53  ;;  %v333_v58 = vadd.f32 %v1358_v55, %v1180_v25 }
 0x156   :  { %v1359_v57 = vpop.f32.mrb[14].mxu0  ;;  %v325_v61 = vadd.f32 %v1180_v25, %v324_v56  ;;  %1433 = vmatpush3.bf16.msra.mxu1 %v1562_v6 }
 0x157   :  { %v336_v59 = vadd.f32 %v1359_v57, %v1180_v25  ;;  %v327_v60 = vpop.f32.mrb[15].mxu0  ;;  %1434 = vmatprep.subr.bf16.mxu1 %v1563_v7 }
 0x158   :  { %v328_v62 = vadd.f32 %v1180_v25, %v327_v60 }
 0x159   :  { %v346_v63 = vpack.c.bf16 %v336_v59, %v333_v58 }
 0x15a   :  { %v345_v0 = vpack.c.bf16 %v328_v62, %v325_v61  ;;  %1435 = vmatpush3.bf16.msra.mxu1 %v1563_v7 }
 0x15b   :  { %1436 = vmatprep.subr.bf16.mxu1 %v1564_v39 }
 0x15c   :  { %1388 = vmatprep.mubr.bf16.mxu1 %v345_v0 }
 0x15d   :  { %1389 = vmatmul.mubr.bf16.gmra.mrb[12].mxu1 %v346_v63 }
 0x15e   :  { %1437 = vmatpush3.bf16.msra.mxu1 %v1564_v39 }
 0x15f   :  { %1438 = vmatprep.subr.bf16.mxu1 %v1565_v40 }
 0x162   :  { %1439 = vmatpush3.bf16.msra.mxu1 %v1565_v40 }
 0x218   :  { %v1378_v8 = vpop.f32.mrb[0].mxu1 }
 0x219   :  { %v445_v9 = vpop.f32.mrb[1].mxu1 }
 0x21a   :  { %v1379_v10 = vpop.f32.mrb[2].mxu1 }
 0x21b   :  { %v509_v11 = vpack.c.bf16 %v1379_v10, %v1378_v8  ;;  %v448_v12 = vpop.f32.mrb[3].mxu1 }
 0x21c   :  { %v508_v13 = vpack.c.bf16 %v448_v12, %v445_v9 }
 0x21e   :  { %1392 = vmatprep.subr.bf16.mxu0 %v508_v13 }
 0x21f   :  { %1393 = vmatpush3.bf16.msra.mxu0 %v508_v13 }
 0x220   :  { %v1382_v14 = vpop.f32.mrb[4].mxu1  ;;  %1394 = vmatprep.subr.bf16.mxu0 %v509_v11 }
 0x221   :  { %v461_v15 = vpop.f32.mrb[5].mxu1 }
 0x222   :  { %v1383_v16 = vpop.f32.mrb[6].mxu1 }
 0x223   :  { %v511_v17 = vpack.c.bf16 %v1383_v16, %v1382_v14  ;;  %v464_v18 = vpop.f32.mrb[7].mxu1  ;;  %1395 = vmatpush3.bf16.msra.mxu0 %v509_v11 }
 0x224   :  { %v510_v19 = vpack.c.bf16 %v464_v18, %v461_v15 }
 0x226   :  { %1396 = vmatprep.subr.bf16.mxu0 %v510_v19 }
 0x227   :  { %1397 = vmatpush3.bf16.msra.mxu0 %v510_v19 }
 0x228   :  { %v1386_v20 = vpop.f32.mrb[8].mxu1  ;;  %1398 = vmatprep.subr.bf16.mxu0 %v511_v17 }
 0x229   :  { %v477_v21 = vpop.f32.mrb[9].mxu1 }
 0x22a   :  { %v1387_v22 = vpop.f32.mrb[10].mxu1 }
 0x22b   :  { %v513_v23 = vpack.c.bf16 %v1387_v22, %v1386_v20  ;;  %v480_v24 = vpop.f32.mrb[11].mxu1  ;;  %1399 = vmatpush3.bf16.msra.mxu0 %v511_v17 }
 0x22c   :  { %v512_v25 = vpack.c.bf16 %v480_v24, %v477_v21 }
 0x22e   :  { %1400 = vmatprep.subr.bf16.mxu0 %v512_v25 }
 0x22f   :  { %1401 = vmatpush3.bf16.msra.mxu0 %v512_v25 }
 0x230   :  { %v1390_v26 = vpop.f32.mrb[12].mxu1  ;;  %1402 = vmatprep.subr.bf16.mxu0 %v513_v23 }
 0x231   :  { %v493_v27 = vpop.f32.mrb[13].mxu1 }
 0x232   :  { %v1391_v28 = vpop.f32.mrb[14].mxu1 }
 0x233   :  { %v515_v29 = vpack.c.bf16 %v1391_v28, %v1390_v26  ;;  %v496_v30 = vpop.f32.mrb[15].mxu1  ;;  %1403 = vmatpush3.bf16.msra.mxu0 %v513_v23 }
 0x234   :  { %v514_v31 = vpack.c.bf16 %v496_v30, %v493_v27 }
 0x236   :  { %1404 = vmatprep.subr.bf16.mxu0 %v514_v31 }
 0x237   :  { %1405 = vmatpush3.bf16.msra.mxu0 %v514_v31 }
 0x238   :  { %1406 = vmatprep.subr.bf16.mxu0 %v515_v29 }
 0x23b   :  { %1407 = vmatpush3.bf16.msra.mxu0 %v515_v29 }
 0x23e   :  { %1409 = vmatmul.mubr.bf16.vlgmr.msra.gmra.mrb[16].mxu0 %v1839_v32 }
 0x23f   :  { %1412 = vmatprep.mubr.bf16.mxu0 %v1844_v33 }
 0x246   :  { %1413 = vmatmul.mubr.bf16.gmra.mrb[20].mxu0 %v1851_v34 }
 0x247   :  { %1416 = vmatprep.mubr.bf16.mxu0 %v1856_v35 }
 0x24e   :  { %1417 = vmatmul.mubr.bf16.gmra.mrb[24].mxu0 %v1863_v36 }
 0x24f   :  { %1420 = vmatprep.mubr.bf16.mxu0 %v1868_v37 }
 0x256   :  { %1421 = vmatmul.mubr.bf16.gmra.mrb[28].mxu0 %v1875_v38 }
 0x257   :  { %1472 = vmatprep.mubr.bf16.mxu0 %v1833_v1 }
 0x311   :  { %v1410_v42 = vpop.f32.mrb[16].mxu0 }
 0x312   :  { %v614_v43 = vadd.f32 %v1410_v42, %v1205_v41  ;;  %v605_v44 = vpop.f32.mrb[17].mxu0  ;;  %v1566_v42 = vld [vmem:[#allocation7] sm:$0xff]  }
 0x313   :  { %v606_v45 = vadd.f32 %v1205_v41, %v605_v44  ;;  %v1411_v46 = vpop.f32.mrb[18].mxu0  ;;  %1488 = vmatprep.subr.bf16.mxu1 %v1566_v42  ;;  %v1568_v44 = vld [vmem:[#allocation7 + $0x10] sm:$0xff]  }
 0x314   :  { %v617_v47 = vadd.f32 %v1411_v46, %v1205_v41  ;;  %v608_v48 = vpop.f32.mrb[19].mxu0  ;;  %v670_v50 = vmax.f32 %v614_v43, 0.0  ;;  %v1567_v43 = vld [vmem:[#allocation7 + $0x8] sm:$0xff]  }
 0x315   :  { %v609_v49 = vadd.f32 %v1205_v41, %v608_v48  ;;  %v668_v52 = vmax.f32 %v606_v45, 0.0  ;;  %v1569_v45 = vld [vmem:[#allocation7 + $0x18] sm:$0xff]   ;;  %v1571_v46 = vld [vmem:[#allocation7 + $0x28] sm:$0xff]  }
 0x316   :  { %v671_v51 = vmax.f32 %v617_v47, 0.0 }
 0x317   :  { %v669_v53 = vmax.f32 %v609_v49, 0.0 }
 0x318   :  { %v685_v54 = vpack.c.bf16 %v671_v51, %v670_v50 }
 0x319   :  { %v684_v55 = vpack.c.bf16 %v669_v53, %v668_v52  ;;  %v1414_v56 = vpop.f32.mrb[20].mxu0 }
 0x31a   :  { %v630_v57 = vadd.f32 %v1414_v56, %v1205_v41  ;;  %v621_v58 = vpop.f32.mrb[21].mxu0 }
 0x31b   :  { %v622_v59 = vadd.f32 %v1205_v41, %v621_v58  ;;  %v1415_v60 = vpop.f32.mrb[22].mxu0  ;;  %1440 = vmatprep.mubr.bf16.mxu1 %v684_v55 }
 0x31c   :  { %v633_v61 = vadd.f32 %v1415_v60, %v1205_v41  ;;  %v624_v62 = vpop.f32.mrb[23].mxu0  ;;  %1441 = vmatmul.mubr.bf16.vlgmr.msra.gmra.mrb[16].mxu1 %v685_v54  ;;  %v674_v0 = vmax.f32 %v630_v57, 0.0 }
 0x31d   :  { %v625_v63 = vadd.f32 %v1205_v41, %v624_v62  ;;  %v672_v2 = vmax.f32 %v622_v59, 0.0  ;;  %1489 = vmatpush3.bf16.msra.mxu1 %v1566_v42 }
 0x31e   :  { %v675_v1 = vmax.f32 %v633_v61, 0.0  ;;  %1490 = vmatprep.subr.bf16.mxu1 %v1567_v43 }
 0x31f   :  { %v673_v3 = vmax.f32 %v625_v63, 0.0 }
 0x320   :  { %v687_v4 = vpack.c.bf16 %v675_v1, %v674_v0 }
 0x321   :  { %v686_v5 = vpack.c.bf16 %v673_v3, %v672_v2  ;;  %v1418_v6 = vpop.f32.mrb[24].mxu0  ;;  %1491 = vmatpush3.bf16.msra.mxu1 %v1567_v43 }
 0x322   :  { %v646_v7 = vadd.f32 %v1418_v6, %v1205_v41  ;;  %v637_v8 = vpop.f32.mrb[25].mxu0  ;;  %1492 = vmatprep.subr.bf16.mxu1 %v1568_v44 }
 0x323   :  { %v638_v9 = vadd.f32 %v1205_v41, %v637_v8  ;;  %v1419_v10 = vpop.f32.mrb[26].mxu0  ;;  %1444 = vmatprep.mubr.bf16.mxu1 %v686_v5  ;;  %v1573_v8 = vld [vmem:[#allocation7 + $0x38] sm:$0xff]  }
 0x324   :  { %v649_v11 = vadd.f32 %v1419_v10, %v1205_v41  ;;  %v640_v12 = vpop.f32.mrb[27].mxu0  ;;  %1445 = vmatmul.mubr.bf16.gmra.mrb[20].mxu1 %v687_v4  ;;  %v678_v14 = vmax.f32 %v646_v7, 0.0  ;;  %v1572_v7 = vld [vmem:[#allocation7 + $0x30] sm:$0xff]  }
 0x325   :  { %v641_v13 = vadd.f32 %v1205_v41, %v640_v12  ;;  %v676_v16 = vmax.f32 %v638_v9, 0.0  ;;  %1493 = vmatpush3.bf16.msra.mxu1 %v1568_v44 }
 0x326   :  { %v679_v15 = vmax.f32 %v649_v11, 0.0  ;;  %1494 = vmatprep.subr.bf16.mxu1 %v1569_v45 }
 0x327   :  { %v677_v17 = vmax.f32 %v641_v13, 0.0 }
 0x328   :  { %v689_v18 = vpack.c.bf16 %v679_v15, %v678_v14 }
 0x329   :  { %v688_v19 = vpack.c.bf16 %v677_v17, %v676_v16  ;;  %v1422_v20 = vpop.f32.mrb[28].mxu0  ;;  %1495 = vmatpush3.bf16.msra.mxu1 %v1569_v45 }
 0x32a   :  { %v662_v21 = vadd.f32 %v1422_v20, %v1205_v41  ;;  %v653_v22 = vpop.f32.mrb[29].mxu0 }
 0x32b   :  { %v654_v23 = vadd.f32 %v1205_v41, %v653_v22  ;;  %v1423_v24 = vpop.f32.mrb[30].mxu0  ;;  %1448 = vmatprep.mubr.bf16.mxu1 %v688_v19 }
 0x32c   :  { %v665_v25 = vadd.f32 %v1423_v24, %v1205_v41  ;;  %v656_v26 = vpop.f32.mrb[31].mxu0  ;;  %1449 = vmatmul.mubr.bf16.gmra.mrb[24].mxu1 %v689_v18  ;;  %v682_v28 = vmax.f32 %v662_v21, 0.0 }
 0x32d   :  { %v657_v27 = vadd.f32 %v1205_v41, %v656_v26  ;;  %v680_v30 = vmax.f32 %v654_v23, 0.0  ;;  %v1570_v41 = vld [vmem:[#allocation7 + $0x20] sm:$0xff]  }
 0x32e   :  { %v683_v29 = vmax.f32 %v665_v25, 0.0  ;;  %1496 = vmatprep.subr.bf16.mxu1 %v1570_v41 }
 0x32f   :  { %v681_v31 = vmax.f32 %v657_v27, 0.0  ;;  %1497 = vmatpush3.bf16.msra.mxu1 %v1570_v41 }
 0x330   :  { %v691_v39 = vpack.c.bf16 %v683_v29, %v682_v28  ;;  %1498 = vmatprep.subr.bf16.mxu1 %v1571_v46 }
 0x331   :  { %v690_v40 = vpack.c.bf16 %v681_v31, %v680_v30 }
 0x333   :  { %1452 = vmatprep.mubr.bf16.mxu1 %v690_v40  ;;  %1499 = vmatpush3.bf16.msra.mxu1 %v1571_v46 }
 0x334   :  { %1453 = vmatmul.mubr.bf16.gmra.mrb[28].mxu1 %v691_v39  ;;  %1500 = vmatprep.subr.bf16.mxu1 %v1572_v7 }
 0x337   :  { %1501 = vmatpush3.bf16.msra.mxu1 %v1572_v7 }
 0x338   :  { %1502 = vmatprep.subr.bf16.mxu1 %v1573_v8 }
 0x33b   :  { %1503 = vmatpush3.bf16.msra.mxu1 %v1573_v8 }
 0x3ef   :  { %v1442_v47 = vpop.f32.mrb[16].mxu1 }
 0x3f0   :  { %v790_v48 = vpop.f32.mrb[17].mxu1 }
 0x3f1   :  { %v1443_v49 = vpop.f32.mrb[18].mxu1 }
 0x3f2   :  { %v854_v50 = vpack.c.bf16 %v1443_v49, %v1442_v47  ;;  %v793_v51 = vpop.f32.mrb[19].mxu1 }
 0x3f3   :  { %v853_v52 = vpack.c.bf16 %v793_v51, %v790_v48 }
 0x3f5   :  { %1456 = vmatprep.subr.bf16.mxu0 %v853_v52 }
 0x3f6   :  { %1457 = vmatpush3.bf16.msra.mxu0 %v853_v52 }
 0x3f7   :  { %v1446_v53 = vpop.f32.mrb[20].mxu1  ;;  %1458 = vmatprep.subr.bf16.mxu0 %v854_v50 }
 0x3f8   :  { %v806_v54 = vpop.f32.mrb[21].mxu1 }
 0x3f9   :  { %v1447_v55 = vpop.f32.mrb[22].mxu1 }
 0x3fa   :  { %v856_v56 = vpack.c.bf16 %v1447_v55, %v1446_v53  ;;  %v809_v57 = vpop.f32.mrb[23].mxu1  ;;  %1459 = vmatpush3.bf16.msra.mxu0 %v854_v50 }
 0x3fb   :  { %v855_v58 = vpack.c.bf16 %v809_v57, %v806_v54 }
 0x3fd   :  { %1460 = vmatprep.subr.bf16.mxu0 %v855_v58 }
 0x3fe   :  { %1461 = vmatpush3.bf16.msra.mxu0 %v855_v58 }
 0x3ff   :  { %v1450_v59 = vpop.f32.mrb[24].mxu1  ;;  %1462 = vmatprep.subr.bf16.mxu0 %v856_v56 }
 0x400   :  { %v822_v60 = vpop.f32.mrb[25].mxu1 }
 0x401   :  { %v1451_v61 = vpop.f32.mrb[26].mxu1 }
 0x402   :  { %v858_v62 = vpack.c.bf16 %v1451_v61, %v1450_v59  ;;  %v825_v63 = vpop.f32.mrb[27].mxu1  ;;  %1463 = vmatpush3.bf16.msra.mxu0 %v856_v56 }
 0x403   :  { %v857_v0 = vpack.c.bf16 %v825_v63, %v822_v60 }
 0x405   :  { %1464 = vmatprep.subr.bf16.mxu0 %v857_v0 }
 0x406   :  { %1465 = vmatpush3.bf16.msra.mxu0 %v857_v0 }
 0x407   :  { %v1454_v1 = vpop.f32.mrb[28].mxu1  ;;  %1466 = vmatprep.subr.bf16.mxu0 %v858_v62 }
 0x408   :  { %v838_v2 = vpop.f32.mrb[29].mxu1 }
 0x409   :  { %v1455_v3 = vpop.f32.mrb[30].mxu1 }
 0x40a   :  { %v860_v4 = vpack.c.bf16 %v1455_v3, %v1454_v1  ;;  %v841_v5 = vpop.f32.mrb[31].mxu1  ;;  %1467 = vmatpush3.bf16.msra.mxu0 %v858_v62 }
 0x40b   :  { %v859_v6 = vpack.c.bf16 %v841_v5, %v838_v2  ;;  %v1223_v2 = vld [vmem:[%s1952_s9] ss:$0 sm:$0xff] }
 0x40d   :  { %1468 = vmatprep.subr.bf16.mxu0 %v859_v6 }
 0x40e   :  { %1469 = vmatpush3.bf16.msra.mxu0 %v859_v6 }
 0x40f   :  { %1470 = vmatprep.subr.bf16.mxu0 %v860_v4 }
 0x412   :  { %1471 = vmatpush3.bf16.msra.mxu0 %v860_v4 }
 0x415   :  { %1473 = vmatmul.mubr.bf16.vlgmr.msra.gmra.mrb[32].mxu0 %v1839_v32  ;;  %v1222_v32 = vld [vmem:[%s1950_s7] ss:$0 sm:$0xff] }
 0x416   :  { %1476 = vmatprep.mubr.bf16.mxu0 %v1844_v33 }
 0x41d   :  { %1477 = vmatmul.mubr.bf16.gmra.mrb[36].mxu0 %v1851_v34 }
 0x41e   :  { %1480 = vmatprep.mubr.bf16.mxu0 %v1856_v35 }
 0x425   :  { %1481 = vmatmul.mubr.bf16.gmra.mrb[40].mxu0 %v1863_v36 }
 0x426   :  { %1484 = vmatprep.mubr.bf16.mxu0 %v1868_v37 }
 0x42d   :  { %1485 = vmatmul.mubr.bf16.gmra.mrb[44].mxu0 %v1875_v38 }
 0x4e8   :  { %v1474_v33 = vpop.f32.mrb[32].mxu0 }
 0x4e9   :  { %v911_v34 = vadd.f32 %v1474_v33, %v1222_v32  ;;  %v902_v9 = vpop.f32.mrb[33].mxu0 }
 0x4ea   :  { %v903_v35 = vadd.f32 %v1222_v32, %v902_v9  ;;  %v1475_v10 = vpop.f32.mrb[34].mxu0 }
 0x4eb   :  { %v914_v36 = vadd.f32 %v1475_v10, %v1222_v32  ;;  %v905_v11 = vpop.f32.mrb[35].mxu0  ;;  %v967_v12 = vmax.f32 %v911_v34, 0.0 }
 0x4ec   :  { %v906_v37 = vadd.f32 %v1222_v32, %v905_v11  ;;  %v965_v13 = vmax.f32 %v903_v35, 0.0 }
 0x4ed   :  { %v968_v38 = vmax.f32 %v914_v36, 0.0 }
 0x4ee   :  { %v966_v14 = vmax.f32 %v906_v37, 0.0 }
 0x4ef   :  { %v982_v15 = vpack.c.bf16 %v968_v38, %v967_v12 }
 0x4f0   :  { %v981_v16 = vpack.c.bf16 %v966_v14, %v965_v13  ;;  %v1478_v17 = vpop.f32.mrb[36].mxu0 }
 0x4f1   :  { %v927_v18 = vadd.f32 %v1478_v17, %v1222_v32  ;;  %v918_v19 = vpop.f32.mrb[37].mxu0 }
 0x4f2   :  { %v919_v20 = vadd.f32 %v1222_v32, %v918_v19  ;;  %v1479_v21 = vpop.f32.mrb[38].mxu0  ;;  %1504 = vmatprep.mubr.bf16.mxu1 %v981_v16 }
 0x4f3   :  { %v930_v22 = vadd.f32 %v1479_v21, %v1222_v32  ;;  %v921_v23 = vpop.f32.mrb[39].mxu0  ;;  %1505 = vmatmul.mubr.bf16.vlgmr.msra.gmra.mrb[32].mxu1 %v982_v15  ;;  %v971_v25 = vmax.f32 %v927_v18, 0.0 }
 0x4f4   :  { %v922_v24 = vadd.f32 %v1222_v32, %v921_v23  ;;  %v969_v27 = vmax.f32 %v919_v20, 0.0 }
 0x4f5   :  { %v972_v26 = vmax.f32 %v930_v22, 0.0 }
 0x4f6   :  { %v970_v28 = vmax.f32 %v922_v24, 0.0 }
 0x4f7   :  { %v984_v29 = vpack.c.bf16 %v972_v26, %v971_v25 }
 0x4f8   :  { %v983_v30 = vpack.c.bf16 %v970_v28, %v969_v27  ;;  %v1482_v31 = vpop.f32.mrb[40].mxu0 }
 0x4f9   :  { %v943_v39 = vadd.f32 %v1482_v31, %v1222_v32  ;;  %v934_v40 = vpop.f32.mrb[41].mxu0 }
 0x4fa   :  { %v935_v42 = vadd.f32 %v1222_v32, %v934_v40  ;;  %v1483_v43 = vpop.f32.mrb[42].mxu0  ;;  %1508 = vmatprep.mubr.bf16.mxu1 %v983_v30 }
 0x4fb   :  { %v946_v44 = vadd.f32 %v1483_v43, %v1222_v32  ;;  %v937_v45 = vpop.f32.mrb[43].mxu0  ;;  %1509 = vmatmul.mubr.bf16.gmra.mrb[36].mxu1 %v984_v29  ;;  %v975_v46 = vmax.f32 %v943_v39, 0.0 }
 0x4fc   :  { %v938_v41 = vadd.f32 %v1222_v32, %v937_v45  ;;  %v973_v48 = vmax.f32 %v935_v42, 0.0 }
 0x4fd   :  { %v976_v47 = vmax.f32 %v946_v44, 0.0 }
 0x4fe   :  { %v974_v49 = vmax.f32 %v938_v41, 0.0 }
 0x4ff   :  { %v986_v50 = vpack.c.bf16 %v976_v47, %v975_v46 }
 0x500   :  { %v985_v51 = vpack.c.bf16 %v974_v49, %v973_v48  ;;  %v1486_v52 = vpop.f32.mrb[44].mxu0 }
 0x501   :  { %v959_v53 = vadd.f32 %v1486_v52, %v1222_v32  ;;  %v950_v54 = vpop.f32.mrb[45].mxu0 }
 0x502   :  { %v951_v55 = vadd.f32 %v1222_v32, %v950_v54  ;;  %v1487_v56 = vpop.f32.mrb[46].mxu0  ;;  %1512 = vmatprep.mubr.bf16.mxu1 %v985_v51 }
 0x503   :  { %v962_v57 = vadd.f32 %v1487_v56, %v1222_v32  ;;  %v953_v58 = vpop.f32.mrb[47].mxu0  ;;  %1513 = vmatmul.mubr.bf16.gmra.mrb[40].mxu1 %v986_v50  ;;  %v979_v60 = vmax.f32 %v959_v53, 0.0 }
 0x504   :  { %v954_v59 = vadd.f32 %v1222_v32, %v953_v58  ;;  %v977_v62 = vmax.f32 %v951_v55, 0.0 }
 0x505   :  { %v980_v61 = vmax.f32 %v962_v57, 0.0 }
 0x506   :  { %v978_v63 = vmax.f32 %v954_v59, 0.0 }
 0x507   :  { %v988_v0 = vpack.c.bf16 %v980_v61, %v979_v60 }
 0x508   :  { %v987_v1 = vpack.c.bf16 %v978_v63, %v977_v62 }
 0x50a   :  { %1516 = vmatprep.mubr.bf16.mxu1 %v987_v1 }
 0x50b   :  { %1517 = vmatmul.mubr.bf16.gmra.mrb[44].mxu1 %v988_v0 }
 0x5c6   :  { %v1506_v3 = vpop.f32.mrb[32].mxu1 }
 0x5c7   :  { %v1103_v4 = vadd.f32 %v1506_v3, %v1223_v2  ;;  %v1094_v5 = vpop.f32.mrb[33].mxu1 }
 0x5c8   :  { %v1095_v6 = vadd.f32 %v1223_v2, %v1094_v5  ;;  %v1507_v7 = vpop.f32.mrb[34].mxu1 }
 0x5c9   :  { %1159 = vst [vmem:[%s1953_s10 + $0x10] sm:$0xff] %v1103_v4  ;;  %v1106_v8 = vadd.f32 %v1507_v7, %v1223_v2  ;;  %v1097_v32 = vpop.f32.mrb[35].mxu1 }
 0x5ca   :  { %1157 = vst [vmem:[%s1953_s10] sm:$0xff] %v1095_v6  ;;  %v1098_v33 = vadd.f32 %v1223_v2, %v1097_v32 }
 0x5cb   :  { %1160 = vst [vmem:[%s1953_s10 + $0x18] sm:$0xff] %v1106_v8 }
 0x5cc   :  { %1158 = vst [vmem:[%s1953_s10 + $0x8] sm:$0xff] %v1098_v33 }
 0x5ce   :  { %v1510_v34 = vpop.f32.mrb[36].mxu1 }
 0x5cf   :  { %v1119_v9 = vadd.f32 %v1510_v34, %v1223_v2  ;;  %v1110_v35 = vpop.f32.mrb[37].mxu1 }
 0x5d0   :  { %v1111_v10 = vadd.f32 %v1223_v2, %v1110_v35  ;;  %v1511_v36 = vpop.f32.mrb[38].mxu1 }
 0x5d1   :  { %1163 = vst [vmem:[%s1953_s10 + $0x30] sm:$0xff] %v1119_v9  ;;  %v1122_v11 = vadd.f32 %v1511_v36, %v1223_v2  ;;  %v1113_v37 = vpop.f32.mrb[39].mxu1 }
 0x5d2   :  { %1161 = vst [vmem:[%s1953_s10 + $0x20] sm:$0xff] %v1111_v10  ;;  %v1114_v12 = vadd.f32 %v1223_v2, %v1113_v37 }
 0x5d3   :  { %1164 = vst [vmem:[%s1953_s10 + $0x38] sm:$0xff] %v1122_v11 }
 0x5d4   :  { %1162 = vst [vmem:[%s1953_s10 + $0x28] sm:$0xff] %v1114_v12 }
 0x5d6   :  { %v1514_v38 = vpop.f32.mrb[40].mxu1 }
 0x5d7   :  { %v1135_v13 = vadd.f32 %v1514_v38, %v1223_v2  ;;  %v1126_v14 = vpop.f32.mrb[41].mxu1 }
 0x5d8   :  { %v1127_v15 = vadd.f32 %v1223_v2, %v1126_v14  ;;  %v1515_v16 = vpop.f32.mrb[42].mxu1 }
 0x5d9   :  { %1167 = vst [vmem:[%s1953_s10 + $0x50] sm:$0xff] %v1135_v13  ;;  %v1138_v17 = vadd.f32 %v1515_v16, %v1223_v2  ;;  %v1129_v18 = vpop.f32.mrb[43].mxu1 }
 0x5da   :  { %1165 = vst [vmem:[%s1953_s10 + $0x40] sm:$0xff] %v1127_v15  ;;  %v1130_v19 = vadd.f32 %v1223_v2, %v1129_v18 }
 0x5db   :  { %1168 = vst [vmem:[%s1953_s10 + $0x58] sm:$0xff] %v1138_v17 }
 0x5dc   :  { %1166 = vst [vmem:[%s1953_s10 + $0x48] sm:$0xff] %v1130_v19 }
 0x5de   :  { %v1518_v20 = vpop.f32.mrb[44].mxu1 }
 0x5df   :  { %v1151_v21 = vadd.f32 %v1518_v20, %v1223_v2  ;;  %v1142_v22 = vpop.f32.mrb[45].mxu1 }
 0x5e0   :  { %v1143_v23 = vadd.f32 %v1223_v2, %v1142_v22  ;;  %v1519_v24 = vpop.f32.mrb[46].mxu1 }
 0x5e1   :  { %1171 = vst [vmem:[%s1953_s10 + $0x70] sm:$0xff] %v1151_v21  ;;  %v1154_v25 = vadd.f32 %v1519_v24, %v1223_v2  ;;  %v1145_v26 = vpop.f32.mrb[47].mxu1 }
 0x5e2   :  { %1169 = vst [vmem:[%s1953_s10 + $0x60] sm:$0xff] %v1143_v23  ;;  %v1146_v27 = vadd.f32 %v1223_v2, %v1145_v26 }
 0x5e3   :  { %1172 = vst [vmem:[%s1953_s10 + $0x78] sm:$0xff] %v1154_v25 }
 0x5e4   :  { %1170 = vst [vmem:[%s1953_s10 + $0x68] sm:$0xff] %v1146_v27 }
 0x5e5   :  { %1177 = vsyncpa [#allocation3], 1 }
 0x5e6   :  { %1178 = vsyncpa [#allocation5], 1 }
 0x5e7   :  { %1179 = vsyncpa [#allocation8], 1 }

</bundles_post_ra>
